<compile_context>
chip_gen: v6e
topology: v6e:2x2x1
jax: 0.10.0
libtpu: 0.0.40
codegen_flags: <defaults>
</compile_context>

<pallas_src>
import jax
import jax.numpy as jnp
from jax.experimental import pallas as pl
from jax.experimental.pallas import tpu as pltpu

EPS = 1e-5


def _critic_kernel(z_ref, c_ref, wstack_ref, wpc_ref, vec_ref, out_ref):
    """Whole forward pass for one (small) batch resident in VMEM.

    z_ref:      [B, latent]             f32
    c_ref:      [B, landmarks_dim]      f32 (flattened landmarks)
    wstack_ref: [3, latent, latent]     f32  (0 = wp_z, 1 = w1, 2 = w2)
    wpc_ref:    [landmarks_dim, latent] f32
    vec_ref:    [8, latent]             f32 rows: 0=bp 1=g1 2=be1 3=g2 4=be2
                                                  5=wo(row) 6=bo(broadcast) 7=pad
    out_ref:    [B, 1]                  f32
    """
    B = z_ref.shape[0]
    inv_b = jnp.float32(1.0 / B)

    vec = vec_ref[...]                          # one load of the packed vectors
    bp, g1, be1 = vec[0:1, :], vec[1:2, :], vec[2:3, :]
    g2, be2, wo = vec[3:4, :], vec[4:5, :], vec[5:6, :]
    bo = vec[6:7, 0:1]                          # (1, 1) scalar bias

    # projection + ReLU (concat replaced by two matmuls)
    h = jnp.dot(z_ref[...], wstack_ref[0], preferred_element_type=jnp.float32)
    h = h + jnp.dot(c_ref[...], wpc_ref[...], preferred_element_type=jnp.float32)
    h = jnp.maximum(h + bp, 0.0)

    def bn_relu(h, w, gamma, beta):
        # Linear bias omitted: cancelled exactly by the BN mean subtraction.
        y = jnp.dot(h, w, preferred_element_type=jnp.float32)
        s1 = jnp.sum(y, axis=0, keepdims=True)           # one-pass moments
        s2 = jnp.sum(y * y, axis=0, keepdims=True)
        mean = s1 * inv_b
        var = jnp.maximum(s2 * inv_b - mean * mean, 0.0)  # biased variance
        scale = gamma * jax.lax.rsqrt(var + EPS)          # folded affine
        shift = beta - mean * scale
        return jnp.maximum(y * scale + shift, 0.0)

    h = bn_relu(h, wstack_ref[1], g1, be1)
    h = bn_relu(h, wstack_ref[2], g2, be2)

    # output layer: N=1 matmul -> lane reduce + scalar bias
    out = jnp.sum(h * wo, axis=1, keepdims=True) + bo
    out_ref[...] = out.astype(out_ref.dtype)


def critic_forward(z, c, packed):
    """z: [B, latent] f32, c: [B, n_landmarks, 2] f32 -> [B, 1] f32."""
    B = z.shape[0]
    z = z.astype(jnp.float32)
    c_flat = c.reshape(B, -1).astype(jnp.float32)   # contiguous reshape, no copy

    args = (z, c_flat, packed["wstack"], packed["wp_c"], packed["vec"])

    def full_spec(a):
        nd = a.ndim
        return pl.BlockSpec(a.shape, lambda *_, _nd=nd: (0,) * _nd)

    # TODO(synk): for large batches, tile B over a grid (weights resident via
    # constant index_maps, lane-dense output) with a two-pass / sum-sumsq BN
    # stat scheme; unnecessary and pure overhead at B=8.
    return pl.pallas_call(
        _critic_kernel,
        out_shape=jax.ShapeDtypeStruct((B, 1), jnp.float32),
        grid=(1,),
        in_specs=[full_spec(a) for a in args],
        out_specs=pl.BlockSpec((B, 1), lambda *_: (0, 0)),
        compiler_params=pltpu.CompilerParams(
            dimension_semantics=("arbitrary",)),
    )(*args)


def init_params(key, latent_dim, landmarks_dim):
    """PyTorch-shaped parameters (Linear weights stored transposed [in, out])."""
    proj_dim = latent_dim + landmarks_dim
    ks = jax.random.split(key, 8)

    def lin(kw, kb, fan_in, fan_out):
        bound = 1.0 / jnp.sqrt(fan_in)
        w = jax.random.uniform(kw, (fan_in, fan_out), jnp.float32, -bound, bound)
        b = jax.random.uniform(kb, (1, fan_out), jnp.float32, -bound, bound)
        return w, b

    wp, bp = lin(ks[0], ks[1], proj_dim, latent_dim)
    w1, b1 = lin(ks[2], ks[3], latent_dim, latent_dim)
    w2, b2 = lin(ks[4], ks[5], latent_dim, latent_dim)
    wo, bo = lin(ks[6], ks[7], latent_dim, 1)

    ones = jnp.ones((1, latent_dim), jnp.float32)
    zeros = jnp.zeros((1, latent_dim), jnp.float32)
    return dict(wp=wp, bp=bp,
                w1=w1, b1=b1, g1=ones, be1=zeros,
                w2=w2, b2=b2, g2=ones, be2=zeros,
                wo=wo, bo=bo)


def pack_params(p, latent_dim):
    """One-time repack into the kernel's 3-buffer layout (done off the hot path)."""
    wp_z = p["wp"][:latent_dim, :]               # [latent, latent]
    wp_c = p["wp"][latent_dim:, :]               # [landmarks_dim, latent]
    wstack = jnp.stack([wp_z, p["w1"], p["w2"]], axis=0)   # [3, latent, latent]
    vec = jnp.concatenate(
        [p["bp"], p["g1"], p["be1"], p["g2"], p["be2"],
         p["wo"].reshape(1, latent_dim),
         jnp.full((1, latent_dim), p["bo"][0, 0], jnp.float32),
         jnp.zeros((1, latent_dim), jnp.float32)],
        axis=0)                                  # [8, latent]
    return dict(wstack=wstack, wp_c=wp_c, vec=vec)


def critic_reference(z, c, p):
    """Pure-JAX reference, faithful to the PyTorch module (incl. dead biases)."""
    B = z.shape[0]
    x = jnp.concatenate([z, c.reshape(B, -1)], axis=1)
    h = jnp.maximum(x @ p["wp"] + p["bp"], 0.0)
    for w, b, g, be in ((p["w1"], p["b1"], p["g1"], p["be1"]),
                        (p["w2"], p["b2"], p["g2"], p["be2"])):
        y = h @ w + b
        mean = y.mean(0, keepdims=True)
        var = ((y - mean) ** 2).mean(0, keepdims=True)
        h = jnp.maximum((y - mean) / jnp.sqrt(var + EPS) * g + be, 0.0)
    return h @ p["wo"] + p["bo"]


if __name__ == "__main__":
    # Small shapes consistent with the module: Critic(latent_dim=32,
    # landmarks_dim=8*2, num_layers=2); batch=8.
    B, LATENT, N_LM = 8, 32, 8
    LANDMARKS_DIM = N_LM * 2

    key = jax.random.PRNGKey(0)
    kz, kc, kp = jax.random.split(key, 3)
    z = jax.random.normal(kz, (B, LATENT), jnp.float32)
    c = jax.random.normal(kc, (B, N_LM, 2), jnp.float32)
    params = init_params(kp, LATENT, LANDMARKS_DIM)
    packed = pack_params(params, LATENT)

    out = jax.block_until_ready(critic_forward(z, c, packed))
    ref = critic_reference(z, c, params)

    assert out.shape == (B, 1), out.shape
    assert jnp.allclose(out, ref, atol=1e-4, rtol=1e-4), (
        float(jnp.max(jnp.abs(out - ref))))
    print("KERNEL_OK")
</pallas_src>

<mosaic_0001>
module attributes {stable_mosaic.version = 11 : i64} {
  func.func @_critic_kernel(%arg0: i32, %arg1: memref<8x32xf32, #tpu.memory_space<vmem>>, %arg2: memref<8x16xf32, #tpu.memory_space<vmem>>, %arg3: memref<3x32x32xf32, #tpu.memory_space<vmem>>, %arg4: memref<16x32xf32, #tpu.memory_space<vmem>>, %arg5: memref<8x32xf32, #tpu.memory_space<vmem>>, %arg6: memref<8x1xf32, #tpu.memory_space<vmem>>) attributes {dimension_semantics = [#tpu.dimension_semantics<arbitrary>], iteration_bounds = array<i64: 1>, scalar_prefetch = 0 : i64, scratch_operands = 0 : i64, tpu.core_type = #tpu.core_type<tc>, window_params = [{pipeline_mode = #tpu.pipeline_mode<synchronous>, transform_indices = @transform_0, window_bounds = array<i64: 8, 32>}, {pipeline_mode = #tpu.pipeline_mode<synchronous>, transform_indices = @transform_1, window_bounds = array<i64: 8, 16>}, {pipeline_mode = #tpu.pipeline_mode<synchronous>, transform_indices = @transform_2, window_bounds = array<i64: 3, 32, 32>}, {pipeline_mode = #tpu.pipeline_mode<synchronous>, transform_indices = @transform_3, window_bounds = array<i64: 16, 32>}, {pipeline_mode = #tpu.pipeline_mode<synchronous>, transform_indices = @transform_4, window_bounds = array<i64: 8, 32>}, {pipeline_mode = #tpu.pipeline_mode<synchronous>, transform_indices = @transform_5, window_bounds = array<i64: 8, 1>}]} {
    %c0 = arith.constant 0 : index
    %c0_0 = arith.constant 0 : index
    %0 = vector.load %arg5[%c0, %c0_0] : memref<8x32xf32, #tpu.memory_space<vmem>>, vector<8x32xf32>
    %1 = vector.extract_strided_slice %0 {offsets = [0, 0], sizes = [1, 32], strides = [1, 1]} : vector<8x32xf32> to vector<1x32xf32>
    %2 = vector.extract_strided_slice %0 {offsets = [1, 0], sizes = [1, 32], strides = [1, 1]} : vector<8x32xf32> to vector<1x32xf32>
    %3 = vector.extract_strided_slice %0 {offsets = [2, 0], sizes = [1, 32], strides = [1, 1]} : vector<8x32xf32> to vector<1x32xf32>
    %4 = vector.extract_strided_slice %0 {offsets = [3, 0], sizes = [1, 32], strides = [1, 1]} : vector<8x32xf32> to vector<1x32xf32>
    %5 = vector.extract_strided_slice %0 {offsets = [4, 0], sizes = [1, 32], strides = [1, 1]} : vector<8x32xf32> to vector<1x32xf32>
    %6 = vector.extract_strided_slice %0 {offsets = [5, 0], sizes = [1, 32], strides = [1, 1]} : vector<8x32xf32> to vector<1x32xf32>
    %7 = vector.extract_strided_slice %0 {offsets = [6, 0], sizes = [1, 1], strides = [1, 1]} : vector<8x32xf32> to vector<1x1xf32>
    %c0_1 = arith.constant 0 : index
    %c0_2 = arith.constant 0 : index
    %8 = vector.load %arg1[%c0_1, %c0_2] : memref<8x32xf32, #tpu.memory_space<vmem>>, vector<8x32xf32>
    %c0_3 = arith.constant 0 : index
    %c0_4 = arith.constant 0 : index
    %c0_5 = arith.constant 0 : index
    %9 = vector.load %arg3[%c0_3, %c0_4, %c0_5] : memref<3x32x32xf32, #tpu.memory_space<vmem>>, vector<1x32x32xf32>
    %10 = vector.shape_cast %9 : vector<1x32x32xf32> to vector<32x32xf32>
    %cst = arith.constant dense<0.000000e+00> : vector<8x32xf32>
    %11 = tpu.matmul %8, %10, %cst {dimension_numbers = #tpu.dot_dimension_numbers<[1], [0], [0], [1], [0, 0, 1, 1], [], []>} : vector<8x32xf32>, vector<32x32xf32>, vector<8x32xf32> -> vector<8x32xf32>
    %c0_6 = arith.constant 0 : index
    %c0_7 = arith.constant 0 : index
    %12 = vector.load %arg2[%c0_6, %c0_7] : memref<8x16xf32, #tpu.memory_space<vmem>>, vector<8x16xf32>
    %c0_8 = arith.constant 0 : index
    %c0_9 = arith.constant 0 : index
    %13 = vector.load %arg4[%c0_8, %c0_9] : memref<16x32xf32, #tpu.memory_space<vmem>>, vector<16x32xf32>
    %cst_10 = arith.constant dense<0.000000e+00> : vector<8x32xf32>
    %14 = tpu.matmul %12, %13, %cst_10 {dimension_numbers = #tpu.dot_dimension_numbers<[1], [0], [0], [1], [0, 0, 1, 1], [], []>} : vector<8x16xf32>, vector<16x32xf32>, vector<8x32xf32> -> vector<8x32xf32>
    %15 = arith.addf %11, %14 : vector<8x32xf32>
    %16 = vector.broadcast %1 : vector<1x32xf32> to vector<8x32xf32>
    %17 = arith.addf %15, %16 : vector<8x32xf32>
    %cst_11 = arith.constant 0.000000e+00 : f32
    %18 = vector.broadcast %cst_11 : f32 to vector<8x32xf32>
    %19 = arith.maximumf %17, %18 : vector<8x32xf32>
    %c1 = arith.constant 1 : index
    %c0_12 = arith.constant 0 : index
    %c0_13 = arith.constant 0 : index
    %20 = vector.load %arg3[%c1, %c0_12, %c0_13] : memref<3x32x32xf32, #tpu.memory_space<vmem>>, vector<1x32x32xf32>
    %21 = vector.shape_cast %20 : vector<1x32x32xf32> to vector<32x32xf32>
    %cst_14 = arith.constant dense<0.000000e+00> : vector<8x32xf32>
    %22 = tpu.matmul %19, %21, %cst_14 {dimension_numbers = #tpu.dot_dimension_numbers<[1], [0], [0], [1], [0, 0, 1, 1], [], []>} : vector<8x32xf32>, vector<32x32xf32>, vector<8x32xf32> -> vector<8x32xf32>
    %cst_15 = arith.constant dense<0.000000e+00> : vector<32xf32>
    %23 = vector.multi_reduction <add>, %22, %cst_15 [0] : vector<8x32xf32> to vector<32xf32>
    %24 = vector.shape_cast %23 : vector<32xf32> to vector<1x32xf32>
    %25 = arith.mulf %22, %22 : vector<8x32xf32>
    %cst_16 = arith.constant dense<0.000000e+00> : vector<32xf32>
    %26 = vector.multi_reduction <add>, %25, %cst_16 [0] : vector<8x32xf32> to vector<32xf32>
    %27 = vector.shape_cast %26 : vector<32xf32> to vector<1x32xf32>
    %cst_17 = arith.constant 1.250000e-01 : f32
    %28 = vector.broadcast %cst_17 : f32 to vector<1x32xf32>
    %29 = arith.mulf %24, %28 : vector<1x32xf32>
    %cst_18 = arith.constant 1.250000e-01 : f32
    %30 = vector.broadcast %cst_18 : f32 to vector<1x32xf32>
    %31 = arith.mulf %27, %30 : vector<1x32xf32>
    %32 = arith.mulf %29, %29 : vector<1x32xf32>
    %33 = arith.subf %31, %32 : vector<1x32xf32>
    %cst_19 = arith.constant 0.000000e+00 : f32
    %34 = vector.broadcast %cst_19 : f32 to vector<1x32xf32>
    %35 = arith.maximumf %33, %34 : vector<1x32xf32>
    %cst_20 = arith.constant 9.99999974E-6 : f32
    %36 = vector.broadcast %cst_20 : f32 to vector<1x32xf32>
    %37 = arith.addf %35, %36 : vector<1x32xf32>
    %38 = math.rsqrt %37 : vector<1x32xf32>
    %39 = arith.mulf %2, %38 : vector<1x32xf32>
    %40 = arith.mulf %29, %39 : vector<1x32xf32>
    %41 = arith.subf %3, %40 : vector<1x32xf32>
    %42 = vector.broadcast %39 : vector<1x32xf32> to vector<8x32xf32>
    %43 = arith.mulf %22, %42 : vector<8x32xf32>
    %44 = vector.broadcast %41 : vector<1x32xf32> to vector<8x32xf32>
    %45 = arith.addf %43, %44 : vector<8x32xf32>
    %cst_21 = arith.constant 0.000000e+00 : f32
    %46 = vector.broadcast %cst_21 : f32 to vector<8x32xf32>
    %47 = arith.maximumf %45, %46 : vector<8x32xf32>
    %c2 = arith.constant 2 : index
    %c0_22 = arith.constant 0 : index
    %c0_23 = arith.constant 0 : index
    %48 = vector.load %arg3[%c2, %c0_22, %c0_23] : memref<3x32x32xf32, #tpu.memory_space<vmem>>, vector<1x32x32xf32>
    %49 = vector.shape_cast %48 : vector<1x32x32xf32> to vector<32x32xf32>
    %cst_24 = arith.constant dense<0.000000e+00> : vector<8x32xf32>
    %50 = tpu.matmul %47, %49, %cst_24 {dimension_numbers = #tpu.dot_dimension_numbers<[1], [0], [0], [1], [0, 0, 1, 1], [], []>} : vector<8x32xf32>, vector<32x32xf32>, vector<8x32xf32> -> vector<8x32xf32>
    %cst_25 = arith.constant dense<0.000000e+00> : vector<32xf32>
    %51 = vector.multi_reduction <add>, %50, %cst_25 [0] : vector<8x32xf32> to vector<32xf32>
    %52 = vector.shape_cast %51 : vector<32xf32> to vector<1x32xf32>
    %53 = arith.mulf %50, %50 : vector<8x32xf32>
    %cst_26 = arith.constant dense<0.000000e+00> : vector<32xf32>
    %54 = vector.multi_reduction <add>, %53, %cst_26 [0] : vector<8x32xf32> to vector<32xf32>
    %55 = vector.shape_cast %54 : vector<32xf32> to vector<1x32xf32>
    %cst_27 = arith.constant 1.250000e-01 : f32
    %56 = vector.broadcast %cst_27 : f32 to vector<1x32xf32>
    %57 = arith.mulf %52, %56 : vector<1x32xf32>
    %cst_28 = arith.constant 1.250000e-01 : f32
    %58 = vector.broadcast %cst_28 : f32 to vector<1x32xf32>
    %59 = arith.mulf %55, %58 : vector<1x32xf32>
    %60 = arith.mulf %57, %57 : vector<1x32xf32>
    %61 = arith.subf %59, %60 : vector<1x32xf32>
    %cst_29 = arith.constant 0.000000e+00 : f32
    %62 = vector.broadcast %cst_29 : f32 to vector<1x32xf32>
    %63 = arith.maximumf %61, %62 : vector<1x32xf32>
    %cst_30 = arith.constant 9.99999974E-6 : f32
    %64 = vector.broadcast %cst_30 : f32 to vector<1x32xf32>
    %65 = arith.addf %63, %64 : vector<1x32xf32>
    %66 = math.rsqrt %65 : vector<1x32xf32>
    %67 = arith.mulf %4, %66 : vector<1x32xf32>
    %68 = arith.mulf %57, %67 : vector<1x32xf32>
    %69 = arith.subf %5, %68 : vector<1x32xf32>
    %70 = vector.broadcast %67 : vector<1x32xf32> to vector<8x32xf32>
    %71 = arith.mulf %50, %70 : vector<8x32xf32>
    %72 = vector.broadcast %69 : vector<1x32xf32> to vector<8x32xf32>
    %73 = arith.addf %71, %72 : vector<8x32xf32>
    %cst_31 = arith.constant 0.000000e+00 : f32
    %74 = vector.broadcast %cst_31 : f32 to vector<8x32xf32>
    %75 = arith.maximumf %73, %74 : vector<8x32xf32>
    %76 = vector.broadcast %6 : vector<1x32xf32> to vector<8x32xf32>
    %77 = arith.mulf %75, %76 : vector<8x32xf32>
    %cst_32 = arith.constant dense<0.000000e+00> : vector<8xf32>
    %78 = vector.multi_reduction <add>, %77, %cst_32 [1] : vector<8x32xf32> to vector<8xf32>
    %79 = vector.shape_cast %78 : vector<8xf32> to vector<8x1xf32>
    %80 = vector.broadcast %7 : vector<1x1xf32> to vector<8x1xf32>
    %81 = arith.addf %79, %80 : vector<8x1xf32>
    %c0_33 = arith.constant 0 : index
    %c0_34 = arith.constant 0 : index
    %82 = vector.load %arg6[%c0_33, %c0_34] : memref<8x1xf32, #tpu.memory_space<vmem>>, vector<8x1xf32>
    tpu.vector_store %arg6[%c0_33, %c0_34], %81 {strides = array<i32>} : memref<8x1xf32, #tpu.memory_space<vmem>>, vector<8x1xf32>,
    return
  }
  func.func @transform_0(%arg0: i32) -> (i32, i32) {
    %c0_i32 = arith.constant 0 : i32
    %c0_i32_0 = arith.constant 0 : i32
    %c0_i32_1 = arith.constant 0 : i32
    return %c0_i32, %c0_i32_0 : i32, i32
  }
  func.func @transform_1(%arg0: i32) -> (i32, i32) {
    %c0_i32 = arith.constant 0 : i32
    %c0_i32_0 = arith.constant 0 : i32
    %c0_i32_1 = arith.constant 0 : i32
    return %c0_i32, %c0_i32_0 : i32, i32
  }
  func.func @transform_2(%arg0: i32) -> (i32, i32, i32) {
    %c0_i32 = arith.constant 0 : i32
    %c0_i32_0 = arith.constant 0 : i32
    %c0_i32_1 = arith.constant 0 : i32
    %c0_i32_2 = arith.constant 0 : i32
    return %c0_i32, %c0_i32_0, %c0_i32_1 : i32, i32, i32
  }
  func.func @transform_3(%arg0: i32) -> (i32, i32) {
    %c0_i32 = arith.constant 0 : i32
    %c0_i32_0 = arith.constant 0 : i32
    %c0_i32_1 = arith.constant 0 : i32
    return %c0_i32, %c0_i32_0 : i32, i32
  }
  func.func @transform_4(%arg0: i32) -> (i32, i32) {
    %c0_i32 = arith.constant 0 : i32
    %c0_i32_0 = arith.constant 0 : i32
    %c0_i32_1 = arith.constant 0 : i32
    return %c0_i32, %c0_i32_0 : i32, i32
  }
  func.func @transform_5(%arg0: i32) -> (i32, i32) {
    %c0_i32 = arith.constant 0 : i32
    %c0_i32_0 = arith.constant 0 : i32
    %c0_i32_1 = arith.constant 0 : i32
    return %c0_i32, %c0_i32_0 : i32, i32
  }
}

</mosaic_0001>

<bundles_post_ra>
// kernel: tpu_custom_call.1
= control target key start
LH: loop header
LB: loop body
LE: loop exit
PB: predicated region body
PF: predicated region fallthrough
CT: control target
= control target key end

     0   :  { %10 = vsyncpa [#allocation3], 0  ;;  %s787_s0 = inlined_call_operand.hbm [shape: f32[8,32], index: 0, kind: input, shape index: {}]   ;;  %s788_s1 = inlined_call_operand.hbm [shape: f32[8,16], index: 1, kind: input, shape index: {}]   ;;  %s789_s2 = inlined_call_operand.hbm [shape: f32[3,32,32], index: 2, kind: input, shape index: {}]   ;;  %s790_s3 = inlined_call_operand.hbm [shape: f32[16,32], index: 3, kind: input, shape index: {}]   ;;  %s791_s4 = inlined_call_operand.hbm [shape: f32[8,32], index: 4, kind: input, shape index: {}]   ;;  %s792_s5 = inlined_call_operand.vmem [shape: f32[8,1], index: 5, kind: output, shape index: {}]  }
   0x1   :  { %11 = vsyncpa [#allocation5], 0 }
   0x2   :  { %12 = vsyncpa [#allocation8], 0  ;;  %s682_s18 = smov [#allocation4]  }
   0x3   :  { %s29_s19 = sshll.u32 %s682_s18, 4  ;;  %s30_s19 = int_to_ptr.vmem [resolvable:$true] %s29_s19 }
   0x4   :  { %s584_s20 = scalar_lea.vmem %s30_s19, 128  ;;  %p589_p1 = scmp.lt.s32.totalorder %s30_s19, %s30_s19 }
   0x5   :  { %p585_p0 = scmp.ne.s32.totalorder %s30_s19, %s584_s20  ;;  %p590_p2 = scmp.lt.s32.totalorder %s584_s20, %s584_s20 }
   0x7   :  { %p591_p3 = por %p590_p2, %p589_p1 }
   0x9   :  { %p592_p4 = pnand %p591_p3, %p585_p0 }
   0xb   :  { %595 = shalt.err (!%p592_p4)
}
   0xc   :  { %32 = dma.hbm_to_vmem [thread:$0]  %s788_s1, 128, %s30_s19, [#allocation5]  }
   0xd   :  { %s683_s23 = smov [#allocation7]   ;;  %s684_s25 = smov [#allocation2]  }
   0xe   :  { %s50_s24 = sshll.u32 %s683_s23, 4  ;;  %s19_s26 = sshll.u32 %s684_s25, 4  ;;  %s51_s24 = int_to_ptr.vmem [resolvable:$true] %s50_s24  ;;  %s20_s26 = int_to_ptr.vmem [resolvable:$true] %s19_s26 }
   0xf   :  { %s604_s27 = scalar_lea.vmem %s51_s24, 256  ;;  %p609_p6 = scmp.lt.s32.totalorder %s51_s24, %s51_s24 }
  0x10   :  { %p605_p5 = scmp.ne.s32.totalorder %s51_s24, %s604_s27  ;;  %p610_p7 = scmp.lt.s32.totalorder %s604_s27, %s604_s27 }
  0x12   :  { %p611_p8 = por %p610_p7, %p609_p6 }
  0x14   :  { %p612_p9 = pnand %p611_p8, %p605_p5 }
  0x16   :  { %615 = shalt.err (!%p612_p9)
}
  0x17   :  { %s685_s28 = smov 128   ;;  %s686_s29 = smov 8  }
  0x18   :  { %56 = dma.hbm_to_vmem [thread:$0]  %s790_s3, 256, %s51_s24, [#allocation8], %s685_s28, %s685_s28, %s686_s29  }
  0x19   :  { %s624_s1 = scalar_lea.vmem %s20_s26, 128  ;;  %p629_p11 = scmp.lt.s32.totalorder %s20_s26, %s20_s26 }
  0x1a   :  { %p625_p10 = scmp.ne.s32.totalorder %s20_s26, %s624_s1  ;;  %p630_p12 = scmp.lt.s32.totalorder %s624_s1, %s624_s1 }
  0x1c   :  { %p631_p13 = por %p630_p12, %p629_p11 }
  0x1e   :  { %p632_p0 = pnand %p631_p13, %p625_p10 }
  0x20   :  { %635 = shalt.err (!%p632_p0)
}
  0x21   :  { %22 = dma.hbm_to_vmem [thread:$0]  %s787_s0, 128, %s20_s26, [#allocation3]  }
  0x22   :  { %s687_s9 = smov [#allocation6]   ;;  %s688_s11 = smov [#allocation9]  }
  0x23   :  { %s38_s10 = sshll.u32 %s687_s9, 4  ;;  %s63_s12 = sshll.u32 %s688_s11, 4  ;;  %s39_s10 = int_to_ptr.vmem [resolvable:$true] %s38_s10  ;;  %s64_s12 = int_to_ptr.vmem [resolvable:$true] %s63_s12 }
  0x24   :  { %s644_s13 = scalar_lea.vmem %s39_s10, 1536  ;;  %p649_p2 = scmp.lt.s32.totalorder %s39_s10, %s39_s10 }
  0x25   :  { %p645_p1 = scmp.ne.s32.totalorder %s39_s10, %s644_s13  ;;  %p650_p3 = scmp.lt.s32.totalorder %s644_s13, %s644_s13 }
  0x27   :  { %p651_p4 = por %p650_p3, %p649_p2 }
  0x29   :  { %p652_p5 = pnand %p651_p4, %p645_p1 }
  0x2b   :  { %655 = shalt.err (!%p652_p5)
}
  0x2c   :  { %44 = dma.hbm_to_vmem [thread:$0]  %s789_s2, 1536, %s39_s10, [#allocation5], %s685_s28, %s685_s28, %s686_s29  }
  0x2d   :  { %s664_s15 = scalar_lea.vmem %s64_s12, 128  ;;  %p669_p7 = scmp.lt.s32.totalorder %s64_s12, %s64_s12 }
  0x2e   :  { %p665_p6 = scmp.ne.s32.totalorder %s64_s12, %s664_s15  ;;  %p670_p8 = scmp.lt.s32.totalorder %s664_s15, %s664_s15 }
  0x30   :  { %p671_p9 = por %p670_p8, %p669_p7 }
  0x32   :  { %p672_p10 = pnand %p671_p9, %p665_p6 }
  0x34   :  { %675 = shalt.err (!%p672_p10)
}
  0x35   :  { %66 = dma.hbm_to_vmem [thread:$0]  %s791_s4, 128, %s64_s12, [#allocation8]  }
  0x36   :  { %676 = dma.done.wait [#allocation3], 128  }
  0x37   :  { %677 = vsyncadd [#allocation3], 4294967168 }
  0x38   :  { %678 = dma.done.wait [#allocation5], 1664  }
  0x39   :  { %679 = vsyncadd [#allocation5], 4294965632 }
  0x3a   :  { %680 = dma.done.wait [#allocation8], 384  }
  0x3b   :  { %681 = vsyncadd [#allocation8], 4294966912  ;;  %v689_v0 = vmov 0.0   ;;  %vm690_vm0 = vmmov 0   ;;  %v87_v1 = vld [vmem:[#allocation6 + $0x18] sm:$0xff]  ;;  %v90_v2 = vld [vmem:[#allocation7 + $0x8] sm:$0xff]  ;;  %v239_v13 = vlaneseq }
  0x3c   :  { %530 = vmatprep.subr.mxu1 %v689_v0  ;;  %523 = vmatprep.subr.mxu0 %v689_v0  ;;  %v86_v3 = vld [vmem:[#allocation6 + $0x10] sm:$0xff]  ;;  %v89_v4 = vld [vmem:[#allocation7] sm:$0xff]  ;;  %v88_v5 = vld [vmem:[#allocation4] sm:$0xff]  ;;  %vm91_vm1 = vcmask 130048   ;;  %vm165_vm2 = vcmask 261120   ;;  %vm492_vm3 = vcmask 7168  }
  0x3d   :  { %527 = vmatprep.mubr.msk.f32.mxu0 %vm690_vm0, %v689_v0  ;;  %538 = vmatprep.mubr.msk.f32.mxu1 %vm690_vm0, %v689_v0  ;;  %v85_v6 = vld [vmem:[#allocation6 + $0x8] sm:$0xff]  ;;  %v84_v7 = vld [vmem:[#allocation6] sm:$0xff]  ;;  %v83_v8 = vld [vmem:[#allocation2] sm:$0xff]  ;;  %v756_v14 = vshrl.u32 %v239_v13, 7 }
  0x3e   :  { %531 = vmatpush3.msra.mxu1 %v87_v1  ;;  %524 = vmatpush3.msra.mxu0 %v90_v2  ;;  %v249_v9 = vld [vmem:[#allocation6 + $0x38] sm:$0xff]  ;;  %v248_v10 = vld [vmem:[#allocation6 + $0x30] sm:$0xff]  ;;  %v247_v11 = vld [vmem:[#allocation6 + $0x28] sm:$0xff] }
  0x3f   :  { %532 = vmatprep.subr.mxu1 %v689_v0  ;;  %525 = vmatprep.subr.mxu0 %v689_v0  ;;  %v246_v12 = vld [vmem:[#allocation6 + $0x20] sm:$0xff]  ;;  %v241_v15 = vsub.s32 0, %v756_v14  ;;  %v759_v17 = vld [vmem:[#allocation9] sm:$0xff]  ;;  %v366_v25 = vld [vmem:[#allocation6 + $0x58] sm:$0xff]  ;;  %v353_v54 = vsub.s32 1, %v756_v14  ;;  %v358_v58 = vsub.s32 2, %v756_v14 }
  0x40   :  { %533 = vmatpush3.msra.mxu1 %v86_v3  ;;  %526 = vmatpush3.msra.mxu0 %v89_v4  ;;  %v365_v26 = vld [vmem:[#allocation6 + $0x50] sm:$0xff]  ;;  %v364_v27 = vld [vmem:[#allocation6 + $0x48] sm:$0xff]  ;;  %v363_v28 = vld [vmem:[#allocation6 + $0x40] sm:$0xff] }
  0x41   :  { %534 = vmatprep.subr.mxu1 %v689_v0  ;;  %528 = vmatmul.mubr.msk.f32.vlgmr.msra.gmra.mxu0 %vm91_vm1, %v88_v5  ;;  %v242_v19 = vrot.slane %v759_v17, %v241_v15 }
  0x42   :  { %535 = vmatpush3.msra.mxu1 %v85_v6  ;;  %541 = vmatprep.subr.mxu0 %v689_v0 }
  0x43   :  { %536 = vmatprep.subr.mxu1 %v689_v0  ;;  %549 = vmatprep.mubr.msk.f32.mxu0 %vm690_vm0, %v689_v0 }
  0x44   :  { %537 = vmatpush3.msra.mxu1 %v84_v7  ;;  %542 = vmatpush3.msra.mxu0 %v249_v9 }
  0x45   :  { %539 = vmatmul.mubr.msk.f32.vlgmr.msra.gmra.mxu1 %vm165_vm2, %v83_v8  ;;  %552 = vmatprep.subr.mxu1 %v689_v0 }
  0x46   :  { %560 = vmatprep.mubr.msk.f32.mxu1 %vm690_vm0, %v689_v0  ;;  %543 = vmatprep.subr.mxu0 %v689_v0 }
  0x47   :  { %544 = vmatpush3.msra.mxu0 %v248_v10  ;;  %553 = vmatpush3.msra.mxu1 %v366_v25 }
  0x48   :  { %545 = vmatprep.subr.mxu0 %v689_v0  ;;  %554 = vmatprep.subr.mxu1 %v689_v0 }
  0x49   :  { %546 = vmatpush3.msra.mxu0 %v247_v11  ;;  %555 = vmatpush3.msra.mxu1 %v365_v26 }
  0x4a   :  { %547 = vmatprep.subr.mxu0 %v689_v0  ;;  %556 = vmatprep.subr.mxu1 %v689_v0 }
  0x4b   :  { %548 = vmatpush3.msra.mxu0 %v246_v12  ;;  %557 = vmatpush3.msra.mxu1 %v364_v27  ;;  %v470_v27 = vsub.s32 3, %v756_v14 }
  0x4c   :  { %558 = vmatprep.subr.mxu1 %v689_v0 }
  0x4d   :  { %559 = vmatpush3.msra.mxu1 %v363_v28 }
 0x101   :  { %v161_v16 = vpop.f32.mrf.mxu0 }
 0x103   :  { %v529_v18 = vpop.f32.mrf.mxu0 }
 0x105   :  { %v235_v20 = vpop.f32.mrf.mxu1 }
 0x106   :  { %v236_v21 = vadd.f32 %v235_v20, %v161_v16 }
 0x107   :  { %v540_v22 = vpop.f32.mrf.mxu1 }
 0x108   :  { %v243_v23 = vadd.f32 %v242_v19, %v236_v21 }
 0x10a   :  { %v244_v24 = vmax.f32 %v243_v23, 0.0 }
 0x10c   :  { %550 = vmatmul.mubr.msk.f32.vlgmr.msra.gmra.mxu0 %vm165_vm2, %v244_v24 }
 0x1cc   :  { %v319_v29 = vpop.f32.mrf.mxu0 }
 0x1cd   :  { %v323_v30 = vsel %vm165_vm2, %v319_v29, 0.0  ;;  %v330_v31 = vmul.f32 %v319_v29, %v319_v29 }
 0x1ce   :  { %v324_v32 = vrot.slane %v323_v30, 4  ;;  %v551_v33 = vpop.f32.mrf.mxu0 }
 0x1cf   :  { %v331_v34 = vsel %vm165_vm2, %v330_v31, 0.0  ;;  %v475_v31 = vsub.s32 4, %v756_v14  ;;  %v481_v33 = vsub.s32 5, %v756_v14 }
 0x1d0   :  { %v325_v35 = vadd.f32 %v324_v32, %v323_v30  ;;  %v332_v36 = vrot.slane %v331_v34, 4 }
 0x1d2   :  { %v326_v37 = vrot.slane %v325_v35, 2  ;;  %v333_v38 = vadd.f32 %v332_v36, %v331_v34 }
 0x1d4   :  { %v327_v39 = vadd.f32 %v326_v37, %v325_v35  ;;  %v334_v40 = vrot.slane %v333_v38, 2  ;;  %v482_v37 = vrot.slane %v759_v17, %v481_v33 }
 0x1d6   :  { %v328_v41 = vrot.slane %v327_v39, 1  ;;  %v335_v42 = vadd.f32 %v334_v40, %v333_v38 }
 0x1d8   :  { %v329_v43 = vadd.f32 %v328_v41, %v327_v39  ;;  %v336_v44 = vrot.slane %v335_v42, 1  ;;  %v489_v41 = vsub.s32 6, %v756_v14 }
 0x1da   :  { %v337_v45 = vadd.f32 %v336_v44, %v335_v42  ;;  %v338_v46 = vmul.f32 0.125, %v329_v43  ;;  %v490_v42 = vrot.slane %v759_v17, %v489_v41 }
 0x1dc   :  { %v339_v47 = vmul.f32 0.125, %v337_v45  ;;  %v340_v48 = vmul.f32 %v338_v46, %v338_v46 }
 0x1de   :  { %v341_v49 = vsub.f32 %v339_v47, %v340_v48 }
 0x1e0   :  { %v342_v50 = vmax.f32 %v341_v49, 0.0 }
 0x1e2   :  { %v343_v51 = vadd.f32 1e-05, %v342_v50 }
 0x1e4   :  { %572 = vrsqrt.f32 %v343_v51 }
 0x1f1   :  { %v573_v52 = vpop.eup %572 }
 0x1f2   :  { %v345_v53 = vmul.f32 %v573_v52, %v759_v17 }
 0x1f4   :  { %v346_v55 = vmul.f32 %v345_v53, %v338_v46  ;;  %v354_v57 = vrot.slane %v345_v53, %v353_v54 }
 0x1f6   :  { %v348_v56 = vrot.slane %v346_v55, 7  ;;  %v355_v60 = vmul.f32 %v354_v57, %v319_v29 }
 0x1f8   :  { %v350_v59 = vsub.f32 %v759_v17, %v348_v56 }
 0x1fa   :  { %v359_v61 = vrot.slane %v350_v59, %v358_v58 }
 0x1fc   :  { %v360_v62 = vadd.f32 %v359_v61, %v355_v60 }
 0x1fe   :  { %v361_v63 = vmax.f32 %v360_v62, 0.0 }
 0x200   :  { %561 = vmatmul.mubr.msk.f32.vlgmr.msra.gmra.mxu1 %vm165_vm2, %v361_v63 }
 0x2c0   :  { %v436_v0 = vpop.f32.mrf.mxu1 }
 0x2c1   :  { %v440_v1 = vsel %vm165_vm2, %v436_v0, 0.0  ;;  %v447_v2 = vmul.f32 %v436_v0, %v436_v0 }
 0x2c2   :  { %v441_v3 = vrot.slane %v440_v1, 4  ;;  %v562_v4 = vpop.f32.mrf.mxu1 }
 0x2c3   :  { %v448_v5 = vsel %vm165_vm2, %v447_v2, 0.0 }
 0x2c4   :  { %v442_v6 = vadd.f32 %v441_v3, %v440_v1  ;;  %v449_v7 = vrot.slane %v448_v5, 4 }
 0x2c6   :  { %v443_v8 = vrot.slane %v442_v6, 2  ;;  %v450_v9 = vadd.f32 %v449_v7, %v448_v5 }
 0x2c8   :  { %v444_v10 = vadd.f32 %v443_v8, %v442_v6  ;;  %v451_v11 = vrot.slane %v450_v9, 2 }
 0x2ca   :  { %v445_v12 = vrot.slane %v444_v10, 1  ;;  %v452_v13 = vadd.f32 %v451_v11, %v450_v9 }
 0x2cc   :  { %v446_v15 = vadd.f32 %v445_v12, %v444_v10  ;;  %v453_v16 = vrot.slane %v452_v13, 1 }
 0x2ce   :  { %v454_v18 = vadd.f32 %v453_v16, %v452_v13  ;;  %v455_v19 = vmul.f32 0.125, %v446_v15 }
 0x2d0   :  { %v456_v20 = vmul.f32 0.125, %v454_v18  ;;  %v457_v21 = vmul.f32 %v455_v19, %v455_v19 }
 0x2d2   :  { %v458_v22 = vsub.f32 %v456_v20, %v457_v21 }
 0x2d4   :  { %v459_v23 = vmax.f32 %v458_v22, 0.0 }
 0x2d6   :  { %v460_v24 = vadd.f32 1e-05, %v459_v23 }
 0x2d8   :  { %574 = vrsqrt.f32 %v460_v24 }
 0x2e5   :  { %v575_v25 = vpop.eup %574 }
 0x2e6   :  { %v462_v26 = vmul.f32 %v575_v25, %v759_v17 }
 0x2e8   :  { %v463_v28 = vmul.f32 %v462_v26, %v455_v19  ;;  %v471_v30 = vrot.slane %v462_v26, %v470_v27 }
 0x2ea   :  { %v465_v29 = vrot.slane %v463_v28, 7  ;;  %v472_v34 = vmul.f32 %v471_v30, %v436_v0 }
 0x2ec   :  { %v467_v32 = vsub.f32 %v759_v17, %v465_v29 }
 0x2ee   :  { %v476_v35 = vrot.slane %v467_v32, %v475_v31 }
 0x2f0   :  { %v477_v36 = vadd.f32 %v476_v35, %v472_v34 }
 0x2f2   :  { %v478_v38 = vmax.f32 %v477_v36, 0.0 }
 0x2f4   :  { %v483_v39 = vmul.f32 %v482_v37, %v478_v38 }
 0x2f6   :  { %v484_v40 = vsel %vm165_vm2, %v483_v39, 0.0 }
 0x2f7   :  { %485 = vadd.xlane.f32.xlu0 %v484_v40 }
 0x380   :  { %v486_v43 = vpop.xlane.xlu0 %485 }
 0x381   :  { %v491_v44 = vadd.f32 %v490_v42, %v486_v43 }
 0x383   :  { %493 = vst.msk [vmem:[%s792_s5] sm:$0xff] %vm492_vm3, %v491_v44 }
 0x384   :  { %498 = vsyncpa [#allocation3], 1 }
 0x385   :  { %499 = vsyncpa [#allocation5], 1 }
 0x386   :  { %500 = vsyncpa [#allocation8], 1 }

</bundles_post_ra>
